<compile_context>
chip_gen: v5e
topology: v5e:2x2
jax: 0.10.0
libtpu: 0.0.40
codegen_flags: <defaults>
</compile_context>

<pallas_src>
import jax
import jax.numpy as jnp
from jax.experimental import pallas as pl
from jax.experimental.pallas import tpu as pltpu


# ----------------------------------------------------------------------------
# Kernel
# ----------------------------------------------------------------------------
def titanic_kernel(x_ref, w1_ref, b1_ref, w2_ref, b2_ref, w3_ref, b3_ref, o_ref):
    # x_ref: [d_pad, TB] bf16 -- features on sublanes, batch on the lane axis.
    xT = x_ref[...]

    # Layer 1: Linear(D, 32) + ReLU.  bf16 MXU matmul, f32 accumulation.
    h1 = jnp.dot(w1_ref[...], xT, preferred_element_type=jnp.float32)
    h1 = jnp.maximum(h1 + b1_ref[...], 0.0)                       # [32, TB] f32

    # Layer 2: Linear(32, 16) + ReLU.  bf16 operands (native MXU path on
    # v6e/v7x, also fine on v5e), f32 accumulation.
    h2 = jnp.dot(w2_ref[...], h1.astype(jnp.bfloat16),
                 preferred_element_type=jnp.float32)
    h2 = jnp.maximum(h2 + b2_ref[...], 0.0)                       # [16, TB] f32

    # Layer 3: Linear(16, 1) + Sigmoid.  Kept off the MXU: VPU multiply +
    # sublane (XLU) reduction gives a lane-dense [1, TB] row.  Sigmoid is
    # exp + approx reciprocal, both on the otherwise-idle EUP slot.
    z = jnp.sum(h2 * w3_ref[...], axis=0, keepdims=True) + b3_ref[...]
    o_ref[...] = pl.reciprocal(1.0 + jnp.exp(-z), approx=True)    # [1, TB] f32


# ----------------------------------------------------------------------------
# Tiling / parameter-layout helpers
# ----------------------------------------------------------------------------
def _round_up(n, m):
    return ((n + m - 1) // m) * m


def _tile_and_pad(batch, block_b):
    """Pick a lane-aligned batch tile and the padded batch size.

    tb is always a multiple of 128 (lowering requirement).  If the whole batch
    would fit in one block but is big enough to split, use two blocks so
    dimension_semantics=("parallel",) can shard across v7x's 2 TensorCores.
    """
    tb = max(128, _round_up(min(block_b, batch), 128))
    b_pad = _round_up(batch, tb)
    if b_pad // tb < 2 and batch > 128:
        tb = max(128, _round_up((batch + 1) // 2, 128))
        b_pad = _round_up(batch, tb)
    return tb, b_pad


def _prep_params(params, d_pad):
    """PyTorch nn.Linear layout -> kernel layout (out_features on sublanes,
    column biases, bf16 matmul weights, zero-padded layer-1 K dim)."""
    w1, b1, w2, b2, w3, b3 = params
    H1, H2 = w1.shape[0], w2.shape[0]
    D = w1.shape[1]
    w1k = jnp.zeros((H1, d_pad), jnp.bfloat16).at[:, :D].set(
        w1.astype(jnp.bfloat16))
    b1k = b1.reshape(H1, 1).astype(jnp.float32)
    w2k = w2.astype(jnp.bfloat16)                       # [16, 32] bf16
    b2k = b2.reshape(H2, 1).astype(jnp.float32)
    w3k = w3.reshape(H2, 1).astype(jnp.float32)         # [16, 1] column
    b3k = b3.reshape(1, 1).astype(jnp.float32)
    return w1k, b1k, w2k, b2k, w3k, b3k


# ----------------------------------------------------------------------------
# Pallas call
# ----------------------------------------------------------------------------
def _pallas_forward(xt, kparams, tb):
    """xt: [d_pad, b_pad] bf16 feature-major slab; tb must divide b_pad and be
    a multiple of 128.  Returns [1, b_pad] f32 probabilities."""
    w1k, b1k, w2k, b2k, w3k, b3k = kparams
    d_pad, b_pad = xt.shape
    H1, H2 = w1k.shape[0], w2k.shape[0]
    assert tb % 128 == 0 and b_pad % tb == 0

    grid = (b_pad // tb,)
    flops = 2 * b_pad * (d_pad * H1 + H1 * H2 + H2)
    bytes_accessed = (xt.size * 2 + b_pad * 4
                      + (w1k.size + w2k.size) * 2
                      + (b1k.size + b2k.size + w3k.size + b3k.size) * 4)
    cost = pl.CostEstimate(flops=flops, transcendentals=b_pad,
                           bytes_accessed=bytes_accessed)

    return pl.pallas_call(
        titanic_kernel,
        out_shape=jax.ShapeDtypeStruct((1, b_pad), jnp.float32),
        grid=grid,
        in_specs=[
            # Streamed x tile (auto double-buffered; DMA trivially hidden at
            # this byte/column ratio -- no need for deeper buffering).
            pl.BlockSpec((d_pad, tb), lambda i: (0, i)),
            # Resident weights / biases (constant index_map -> fetched once).
            pl.BlockSpec((H1, d_pad), lambda i: (0, 0)),
            pl.BlockSpec((H1, 1), lambda i: (0, 0)),
            pl.BlockSpec((H2, H1), lambda i: (0, 0)),
            pl.BlockSpec((H2, 1), lambda i: (0, 0)),
            pl.BlockSpec((H2, 1), lambda i: (0, 0)),
            pl.BlockSpec((1, 1), lambda i: (0, 0)),
        ],
        out_specs=pl.BlockSpec((1, tb), lambda i: (0, i)),   # lane-dense output
        compiler_params=pltpu.CompilerParams(
            dimension_semantics=("parallel",),               # 2 TCs on v7x
        ),
        cost_estimate=cost,
    )(xt, w1k, b1k, w2k, b2k, w3k, b3k)


# ----------------------------------------------------------------------------
# Public entry points
# ----------------------------------------------------------------------------
def titanic_forward_feature_major(xt, params, *, block_b=8192):
    """Zero-extra-pass entry point.

    xt: [d_pad, b_pad] bfloat16, feature-major (batch on the lane axis),
        b_pad a multiple of 128, padded columns zero.  Emit this layout from
        your data pipeline to avoid the extra HBM transpose/cast pass.
    Returns [1, b_pad] float32 probabilities (padded columns are garbage).
    """
    d_pad, b_pad = xt.shape
    assert b_pad % 128 == 0, "b_pad must be a multiple of 128"
    # Largest lane-aligned tile <= block_b that divides b_pad.
    tb = max(128, min((block_b // 128) * 128, b_pad))
    while b_pad % tb != 0:
        tb -= 128
    # Prefer >=2 grid blocks (v7x megacore) when it keeps tiles lane-aligned.
    if b_pad // tb < 2 and b_pad >= 256 and (b_pad // 2) % 128 == 0:
        tb = b_pad // 2
    kparams = _prep_params(params, d_pad)
    return _pallas_forward(xt, kparams, tb)


def titanic_forward(x, params, *, block_b=8192):
    """PyTorch-convention forward: x [B, D] float32 -> [B, 1] float32.

    NOTE: the transpose / cast / pad into the kernel's feature-major bf16
    layout is one extra HBM pass over x.  For large-B hot paths, produce that
    layout upstream and call titanic_forward_feature_major directly (or
    experiment with pltpu.CompilerParams(allow_input_fusion=...)).
    Sweep block_b in 8192-32768 for very large B (cap ~8-16K on v5e, or set
    vmem_limit_bytes, to stay inside its 16 MiB scoped-VMEM default).
    """
    B, D = x.shape
    d_pad = _round_up(D, 16)
    tb, b_pad = _tile_and_pad(B, block_b)

    xt = jnp.zeros((d_pad, b_pad), jnp.bfloat16).at[:D, :B].set(
        x.T.astype(jnp.bfloat16))
    kparams = _prep_params(params, d_pad)
    out = _pallas_forward(xt, kparams, tb)

    # PyTorch-shaped result; this small slice/reshape is a separate (tiny) XLA
    # op -- consumers that can take the [1, b_pad] row should use the
    # feature-major entry point instead.
    return out[0, :B].reshape(B, 1)


# ----------------------------------------------------------------------------
# Reference + init
# ----------------------------------------------------------------------------
def init_params(key, input_dim):
    """Deterministic parameter init in PyTorch nn.Linear layout (Kaiming-
    uniform-like; exact PyTorch init values are not reproduced)."""
    ks = jax.random.split(key, 6)

    def lin(kw, kb, fan_in, fan_out):
        bound = 1.0 / jnp.sqrt(fan_in)
        w = jax.random.uniform(kw, (fan_out, fan_in), jnp.float32, -bound, bound)
        b = jax.random.uniform(kb, (fan_out,), jnp.float32, -bound, bound)
        return w, b

    w1, b1 = lin(ks[0], ks[1], input_dim, 32)
    w2, b2 = lin(ks[2], ks[3], 32, 16)
    w3, b3 = lin(ks[4], ks[5], 16, 1)
    return (w1, b1, w2, b2, w3, b3)


def reference_forward(x, params):
    """Pure-JAX reference matching the kernel's numerics (bf16 matmul
    operands for layers 1-2, f32 accumulation, f32 layer-3 + sigmoid)."""
    w1, b1, w2, b2, w3, b3 = params
    h1 = jnp.dot(x.astype(jnp.bfloat16), w1.T.astype(jnp.bfloat16),
                 preferred_element_type=jnp.float32) + b1
    h1 = jnp.maximum(h1, 0.0)
    h2 = jnp.dot(h1.astype(jnp.bfloat16), w2.T.astype(jnp.bfloat16),
                 preferred_element_type=jnp.float32) + b2
    h2 = jnp.maximum(h2, 0.0)
    return jax.nn.sigmoid(h2 @ w3.T + b3)


# ----------------------------------------------------------------------------
# Self-test
# ----------------------------------------------------------------------------
if __name__ == "__main__":
    key = jax.random.PRNGKey(0)
    k_x, k_p = jax.random.split(key)

    input_dim = 7   # typical Titanic feature count after preprocessing
    batch = 300     # small; not a tile multiple -> exercises padding and the
                    # >=2-block megacore split

    x = jax.random.normal(k_x, (batch, input_dim), jnp.float32)
    params = init_params(k_p, input_dim)

    out = jax.block_until_ready(titanic_forward(x, params))
    ref = reference_forward(x, params)

    assert out.shape == (batch, 1)
    assert bool(jnp.all(jnp.isfinite(out)))
    err = float(jnp.max(jnp.abs(out - ref)))
    # Tolerance covers bf16 layer-2 operands + the EUP approx reciprocal.
    assert err < 2e-3, err

    print("KERNEL_OK")
</pallas_src>

<mosaic_0001>
module attributes {stable_mosaic.version = 11 : i64} {
  func.func @titanic_kernel(%arg0: i32, %arg1: memref<16x256xbf16, #tpu.memory_space<vmem>>, %arg2: memref<32x16xbf16, #tpu.memory_space<vmem>>, %arg3: memref<32x1xf32, #tpu.memory_space<vmem>>, %arg4: memref<16x32xbf16, #tpu.memory_space<vmem>>, %arg5: memref<16x1xf32, #tpu.memory_space<vmem>>, %arg6: memref<16x1xf32, #tpu.memory_space<vmem>>, %arg7: memref<1x1xf32, #tpu.memory_space<vmem>>, %arg8: memref<1x256xf32, #tpu.memory_space<vmem>>) attributes {dimension_semantics = [#tpu.dimension_semantics<parallel>], iteration_bounds = array<i64: 2>, scalar_prefetch = 0 : i64, scratch_operands = 0 : i64, tpu.core_type = #tpu.core_type<tc>, window_params = [{transform_indices = @transform_0, window_bounds = array<i64: 16, 256>}, {pipeline_mode = #tpu.pipeline_mode<synchronous>, transform_indices = @transform_1, window_bounds = array<i64: 32, 16>}, {pipeline_mode = #tpu.pipeline_mode<synchronous>, transform_indices = @transform_2, window_bounds = array<i64: 32, 1>}, {pipeline_mode = #tpu.pipeline_mode<synchronous>, transform_indices = @transform_3, window_bounds = array<i64: 16, 32>}, {pipeline_mode = #tpu.pipeline_mode<synchronous>, transform_indices = @transform_4, window_bounds = array<i64: 16, 1>}, {pipeline_mode = #tpu.pipeline_mode<synchronous>, transform_indices = @transform_5, window_bounds = array<i64: 16, 1>}, {pipeline_mode = #tpu.pipeline_mode<synchronous>, transform_indices = @transform_6, window_bounds = array<i64: 1, 1>}, {transform_indices = @transform_7, window_bounds = array<i64: 1, 256>}]} {
    %c0 = arith.constant 0 : index
    %c0_0 = arith.constant 0 : index
    %0 = vector.load %arg1[%c0, %c0_0] : memref<16x256xbf16, #tpu.memory_space<vmem>>, vector<16x256xbf16>
    %c0_1 = arith.constant 0 : index
    %c0_2 = arith.constant 0 : index
    %1 = vector.load %arg2[%c0_1, %c0_2] : memref<32x16xbf16, #tpu.memory_space<vmem>>, vector<32x16xbf16>
    %cst = arith.constant dense<0.000000e+00> : vector<32x256xf32>
    %2 = tpu.matmul %1, %0, %cst {dimension_numbers = #tpu.dot_dimension_numbers<[1], [0], [0], [1], [0, 0, 1, 1], [], []>} : vector<32x16xbf16>, vector<16x256xbf16>, vector<32x256xf32> -> vector<32x256xf32>
    %c0_3 = arith.constant 0 : index
    %c0_4 = arith.constant 0 : index
    %3 = vector.load %arg3[%c0_3, %c0_4] : memref<32x1xf32, #tpu.memory_space<vmem>>, vector<32x1xf32>
    %4 = vector.broadcast %3 : vector<32x1xf32> to vector<32x256xf32>
    %5 = arith.addf %2, %4 : vector<32x256xf32>
    %cst_5 = arith.constant 0.000000e+00 : f32
    %6 = vector.broadcast %cst_5 : f32 to vector<32x256xf32>
    %7 = arith.maximumf %5, %6 : vector<32x256xf32>
    %c0_6 = arith.constant 0 : index
    %c0_7 = arith.constant 0 : index
    %8 = vector.load %arg4[%c0_6, %c0_7] : memref<16x32xbf16, #tpu.memory_space<vmem>>, vector<16x32xbf16>
    %9 = arith.truncf %7 : vector<32x256xf32> to vector<32x256xbf16>
    %cst_8 = arith.constant dense<0.000000e+00> : vector<16x256xf32>
    %10 = tpu.matmul %8, %9, %cst_8 {dimension_numbers = #tpu.dot_dimension_numbers<[1], [0], [0], [1], [0, 0, 1, 1], [], []>} : vector<16x32xbf16>, vector<32x256xbf16>, vector<16x256xf32> -> vector<16x256xf32>
    %c0_9 = arith.constant 0 : index
    %c0_10 = arith.constant 0 : index
    %11 = vector.load %arg5[%c0_9, %c0_10] : memref<16x1xf32, #tpu.memory_space<vmem>>, vector<16x1xf32>
    %12 = vector.broadcast %11 : vector<16x1xf32> to vector<16x256xf32>
    %13 = arith.addf %10, %12 : vector<16x256xf32>
    %cst_11 = arith.constant 0.000000e+00 : f32
    %14 = vector.broadcast %cst_11 : f32 to vector<16x256xf32>
    %15 = arith.maximumf %13, %14 : vector<16x256xf32>
    %c0_12 = arith.constant 0 : index
    %c0_13 = arith.constant 0 : index
    %16 = vector.load %arg6[%c0_12, %c0_13] : memref<16x1xf32, #tpu.memory_space<vmem>>, vector<16x1xf32>
    %17 = vector.broadcast %16 : vector<16x1xf32> to vector<16x256xf32>
    %18 = arith.mulf %15, %17 : vector<16x256xf32>
    %cst_14 = arith.constant dense<0.000000e+00> : vector<256xf32>
    %19 = vector.multi_reduction <add>, %18, %cst_14 [0] : vector<16x256xf32> to vector<256xf32>
    %20 = vector.shape_cast %19 : vector<256xf32> to vector<1x256xf32>
    %c0_15 = arith.constant 0 : index
    %c0_16 = arith.constant 0 : index
    %21 = vector.load %arg7[%c0_15, %c0_16] : memref<1x1xf32, #tpu.memory_space<vmem>>, vector<1x1xf32>
    %22 = vector.broadcast %21 : vector<1x1xf32> to vector<1x256xf32>
    %23 = arith.addf %20, %22 : vector<1x256xf32>
    %cst_17 = arith.constant 0.000000e+00 : f32
    %24 = vector.broadcast %cst_17 : f32 to vector<1x256xf32>
    %25 = arith.subf %24, %23 : vector<1x256xf32>
    %26 = math.exp %25 : vector<1x256xf32>
    %cst_18 = arith.constant 1.000000e+00 : f32
    %27 = vector.broadcast %cst_18 : f32 to vector<1x256xf32>
    %28 = arith.addf %27, %26 : vector<1x256xf32>
    %29 = tpu.reciprocal %28 {approx = true} : vector<1x256xf32> -> vector<1x256xf32>
    %c0_19 = arith.constant 0 : index
    %c0_20 = arith.constant 0 : index
    %30 = vector.load %arg8[%c0_19, %c0_20] : memref<1x256xf32, #tpu.memory_space<vmem>>, vector<1x256xf32>
    tpu.vector_store %arg8[%c0_19, %c0_20], %29 {strides = array<i32>} : memref<1x256xf32, #tpu.memory_space<vmem>>, vector<1x256xf32>,
    return
  }
  func.func @transform_0(%arg0: i32) -> (i32, i32) {
    %c0_i32 = arith.constant 0 : i32
    %c0_i32_0 = arith.constant 0 : i32
    return %c0_i32, %arg0 : i32, i32
  }
  func.func @transform_1(%arg0: i32) -> (i32, i32) {
    %c0_i32 = arith.constant 0 : i32
    %c0_i32_0 = arith.constant 0 : i32
    %c0_i32_1 = arith.constant 0 : i32
    return %c0_i32, %c0_i32_0 : i32, i32
  }
  func.func @transform_2(%arg0: i32) -> (i32, i32) {
    %c0_i32 = arith.constant 0 : i32
    %c0_i32_0 = arith.constant 0 : i32
    %c0_i32_1 = arith.constant 0 : i32
    return %c0_i32, %c0_i32_0 : i32, i32
  }
  func.func @transform_3(%arg0: i32) -> (i32, i32) {
    %c0_i32 = arith.constant 0 : i32
    %c0_i32_0 = arith.constant 0 : i32
    %c0_i32_1 = arith.constant 0 : i32
    return %c0_i32, %c0_i32_0 : i32, i32
  }
  func.func @transform_4(%arg0: i32) -> (i32, i32) {
    %c0_i32 = arith.constant 0 : i32
    %c0_i32_0 = arith.constant 0 : i32
    %c0_i32_1 = arith.constant 0 : i32
    return %c0_i32, %c0_i32_0 : i32, i32
  }
  func.func @transform_5(%arg0: i32) -> (i32, i32) {
    %c0_i32 = arith.constant 0 : i32
    %c0_i32_0 = arith.constant 0 : i32
    %c0_i32_1 = arith.constant 0 : i32
    return %c0_i32, %c0_i32_0 : i32, i32
  }
  func.func @transform_6(%arg0: i32) -> (i32, i32) {
    %c0_i32 = arith.constant 0 : i32
    %c0_i32_0 = arith.constant 0 : i32
    %c0_i32_1 = arith.constant 0 : i32
    return %c0_i32, %c0_i32_0 : i32, i32
  }
  func.func @transform_7(%arg0: i32) -> (i32, i32) {
    %c0_i32 = arith.constant 0 : i32
    %c0_i32_0 = arith.constant 0 : i32
    return %c0_i32, %arg0 : i32, i32
  }
}

</mosaic_0001>

<bundles_post_ra>
// kernel: tpu_custom_call.1
= control target key start
LH: loop header
LB: loop body
LE: loop exit
PB: predicated region body
PF: predicated region fallthrough
CT: control target
= control target key end

     0   :  { %s957_s0 = inlined_call_operand.vmem [shape: bf16[16,512], index: 0, kind: input, shape index: {}]   ;;  %s958_s1 = inlined_call_operand.vmem [shape: bf16[32,16], index: 1, kind: input, shape index: {}]   ;;  %s959_s2 = inlined_call_operand.vmem [shape: f32[32,1], index: 2, kind: input, shape index: {}]   ;;  %s960_s3 = inlined_call_operand.vmem [shape: bf16[16,32], index: 3, kind: input, shape index: {}]   ;;  %s961_s4 = inlined_call_operand.vmem [shape: f32[16,1], index: 4, kind: input, shape index: {}]   ;;  %s962_s5 = inlined_call_operand.vmem [shape: f32[16,1], index: 5, kind: input, shape index: {}]   ;;  %s963_s6 = inlined_call_operand.<no memory space> [shape: f32[1,1], index: 6, kind: input, shape index: {}]   ;;  %s964_s7 = inlined_call_operand.hbm [shape: f32[1,512], index: 7, kind: output, shape index: {}]  }
   0x1   :  { %v12_v0 = vstv %s963_s6 }
   0x2   :  { %13 = vst [vmem:[#allocation2] sm:$0x1] %v12_v0 }
   0x3   :  { %14 = vsyncpa [#allocation5], 0 }
   0x4   :  { %16 = vsyncpa [#allocation5 + $0x1], 0  ;;  %s829_s26 = smov 0   ;;  %s831_s27 = smov 0  }
   0x5   :  { %s833_s28 = smov 0   ;;  %s835_s29 = smov 0  }
   0x6 LB: > { %s624_s6 = sadd.s32 4294967295, %s783_s29   ;;  %s625_s30 = sadd.s32 4294967294, %s783_s29   ;;  %s783_s29 = sphi %s835_s29, %s970_s29   ;;  %s779_s28 = sphi %s833_s28, %s969_s28   ;;  %s775_s27 = sphi %s831_s27, %s968_s27   ;;  %s771_s26 = sphi %s829_s26, %s967_s26  }
   0x7   : > { %s852_s8 = sadd.s32 1, %s783_s29   ;;  %s29_s9 = sadd.s32 1, %s779_s28 }
   0x8   : > { %s26_s10 = ssub.s32 %s783_s29, %s852_s8  ;;  %p36_p0 = scmp.ne.s32.totalorder %s779_s28, %s775_s27 }
   0x9   : > { %p27_p1 = scmp.eq.s32.totalorder %s26_s10, 0  ;;  %p37_p2 = scmp.eq.s32.totalorder %s783_s29, 0 }
   0xa   : > { %p192_p3 = scmp.eq.s32.totalorder %s624_s6, 1  ;;  %p197_p4 = scmp.ne.s32.totalorder %s775_s27, %s771_s26 }
   0xb   : > { %s865_s11 = scalar_select %p27_p1, %s779_s28, %s29_s9  }
   0xc   : > { %p38_p5 = por %p37_p2, %p36_p0  ;;  %p867_p6 = por %p192_p3, %p36_p0 }
   0xd   : > { %p198_p7 = scmp.eq.s32.totalorder %s625_s30, 1  ;;  %p627_p9 = scmp.ge.s32.totalorder %s783_s29, 2 }
   0xf   : > { %p871_p8 = por %p198_p7, %p197_p4  ;;  %232 = sbr.rel (%p627_p9) target bundleno = 26 (0x1a), region = 40 }
  0x14   : > { %235 = sbr.rel (!%p38_p5) target bundleno = 26 (0x1a), region = 44  ;;  %s237_s14 = sand.u32 (%p38_p5), 1, %s779_s28  }
  0x15   : > { %s664_s15 = sshll.u32 (%p38_p5), %s783_s29, 3  ;;  %s628_s16 = sshll.u32 (%p38_p5), %s237_s14, 4 }
  0x16   : > { %s242_s19 = scalar_lea.vmem (%p38_p5), %s957_s0, %s664_s15  ;;  %s239_s20 = scalar_lea.vmem (%p38_p5), [#allocation3], %s628_s16 }
  0x17   : > { %v273_v1 = vld [vmem:[%s242_s19] sm:$0xff] (%p38_p5)  ;;  %v275_v2 = vld [vmem:[%s242_s19 + $0x10] sm:$0xff] (%p38_p5) }
  0x18   : > { %274 = vst [vmem:[%s239_s20] sm:$0xff] (%p38_p5), %v273_v1 }
  0x19   : > { %276 = vst [vmem:[%s239_s20 + $0x8] sm:$0xff] %v275_v2 }
  0x1a PF: > { %p631_p10 = scmp.ge.s32.totalorder %s783_s29, 1  ;;  %p281_p11 = scmp.lt.s32.totalorder %s783_s29, 3 }
  0x1c   : > { %p282_p12 = pnand %p631_p10, %p281_p11 }
  0x1d   : > { %s886_s21 = sand.u32 (!%p282_p12), 1, %s775_s27   ;;  %s661_s18 = sshll.u32 (!%p282_p12), %s624_s6, 1 }
  0x1e   : > { %285 = sbr.rel (%p282_p12) target bundleno = 394 (0x18a), region = 82  ;;  %s632_s30 = sshll.u32 (!%p282_p12), %s886_s21, 4 }
  0x1f   : > { %s290_s9 = scalar_lea.vmem (!%p282_p12), [#allocation3], %s632_s30  ;;  %s633_s17 = sshll.u32 (!%p282_p12), %s886_s21, 1 }
  0x20   : > { %s555_s22 = scalar_lea.hbm (!%p282_p12), %s964_s7, %s661_s18  ;;  %s318_s23 = scalar_lea.vmem (!%p282_p12), [#allocation4], %s633_s17 }
  0x21   : > { %s557_s24 = sshll.u32 (!%p282_p12), %s318_s23, 4  ;;  %s559_s25 = sshll.u32 (!%p282_p12), %s555_s22, 4  ;;  %s558_s24 = int_to_ptr.vmem [resolvable:$true] %s557_s24  ;;  %s560_s25 = int_to_ptr.hbm [resolvable:$true] %s559_s25 }
  0x22   : > { %s545_s6 = scalar_lea.sflag (!%p282_p12), [#allocation5], %s886_s21  ;;  %s735_s30 = sshra.s32 (!%p282_p12), %s560_s25, 4  ;;  %s736_s30 = int_to_ptr.hbm [resolvable:$true] %s735_s30 }
  0x23   : > { %v330_v3 = vld [vmem:[%s959_s2 + $0x10] sm:$0xff]  ;;  %v328_v4 = vld [vmem:[%s959_s2] sm:$0xff]  ;;  %v785_v5 = vmov 0   ;;  %v666_v7 = vld [vmem:[%s290_s9 + $0x4] sm:$0xf0]  ;;  %vm372_vm0 = vcmask 130048   ;;  %p742_p2 = scmp.lt.s32.totalorder %s736_s30, %s964_s7 }
  0x24   : > { %711 = vset.pattern.permute.xlu1 %v785_v5  ;;  %710 = vset.pattern.permute.xlu0 %v785_v5  ;;  %v644_v6 = vld [vmem:[%s290_s9] sm:$0xf]  ;;  %v665_v8 = vld [vmem:[%s290_s9 + $0x4] sm:$0xf]  ;;  %v646_v10 = vld [vmem:[%s290_s9 + $0x8] sm:$0xf0] }
  0x25   : > { %344 = vperm.xlu0 %710, %v330_v3   ;;  %334 = vperm.xlu1 %711, %v328_v4   ;;  %v645_v9 = vor.u32 %v666_v7, %v644_v6  ;;  %v649_v11 = vor.u32 %v665_v8, %v646_v10  ;;  %v667_v12 = vld [vmem:[%s958_s1] sm:$0xff]  ;;  %v331_v13 = vld [vmem:[%s959_s2 + $0x18] sm:$0xff]  ;;  %v329_v14 = vld [vmem:[%s959_s2 + $0x8] sm:$0xff]  ;;  %vm448_vm1 = vcmask 261120   ;;  %vm536_vm2 = vcmask 1040384   ;;  %s737_s9 = scalar_lea.hbm %s736_s30, 2 }
  0x26   : > { %712 = vset.pattern.permute.xlu2 %v785_v5  ;;  %v484_v15 = vld [vmem:[%s962_s5] sm:$0xff]  ;;  %v485_v16 = vld [vmem:[%s962_s5 + $0x8] sm:$0xff]  ;;  %p738_p13 = scmp.ne.s32.totalorder %s736_s30, %s737_s9  ;;  %s741_s15 = scalar_lea.hbm %s964_s7, 4 }
  0x27   : > { %386 = vmatpush.bf16.msra.mxu0 %v645_v9  ;;  %405 = vmatpush.bf16.msra.mxu1 %v649_v11  ;;  %v668_v17 = vld [vmem:[%s958_s1 + $0x8] sm:$0xff]  ;;  %v431_v20 = vld [vmem:[%s961_s4] sm:$0xff]  ;;  %p743_p3 = scmp.lt.s32.totalorder %s741_s15, %s737_s9 }
  0x28   : > { %435 = vperm.xlu2 %712, %v431_v20   ;;  %v432_v24 = vld [vmem:[%s961_s4 + $0x8] sm:$0xff]  ;;  %v514_v28 = vld [vmem:[#allocation2] sm:$0x1]  ;;  %p739_p0 = pnand %p738_p13, %p867_p6 }
  0x29   : > { %v669_v53 = vld [vmem:[%s960_s3] sm:$0xff]  ;;  %p744_p4 = por %p743_p3, %p742_p2 }
  0x2a   : > { %650 = vmatmul.msk.bf16.vlgmr.msra.gmra.mxu0 %vm372_vm0, %v667_v12  ;;  %652 = vmatmul.msk.bf16.vlgmr.msra.gmra.mxu1 %vm372_vm0, %v667_v12  ;;  %p740_p1 = pneg %p739_p0 }
  0x2c   : > { %p745_p5 = pnand %p744_p4, %p740_p1 }
  0x2d   : > { %349 = vperm.xlu0 %710, %v331_v13   ;;  %339 = vperm.xlu1 %711, %v329_v14  }
  0x30   : > { %440 = vperm.xlu2 %712, %v432_v24  }
  0x35   : > { %488 = vperm.xlu0 %710, %v484_v15   ;;  %493 = vperm.xlu1 %711, %v485_v16  }
  0x38   : > { %517 = vperm.xlu2 %712, %v514_v28  }
  0x3a   : > { %651 = vmatmul.msk.bf16.gmra.mxu0 %vm372_vm0, %v668_v17  ;;  %653 = vmatmul.msk.bf16.gmra.mxu1 %vm372_vm0, %v668_v17 }
  0x82   : > { %v436_v54 = vpop.permute.xlu2 %435 }
  0x8a   : > { %v441_v59 = vpop.permute.xlu2 %440 }
  0x97   : > { %v335_v23 = vpop.permute.xlu1 %334  ;;  %v345_v25 = vpop.permute.xlu0 %344 }
  0x9f   : > { %v340_v29 = vpop.permute.xlu1 %339  ;;  %v350_v31 = vpop.permute.xlu0 %349 }
  0xa7   : > { %v388_v18 = vpop.f32.mrf.mxu0  ;;  %v407_v19 = vpop.f32.mrf.mxu1 }
  0xa8   : > { %v389_v39 = vadd.f32 %v388_v18, %v335_v23  ;;  %v408_v42 = vadd.f32 %v407_v19, %v335_v23  ;;  %v489_v3 = vpop.permute.xlu0 %488  ;;  %v494_v4 = vpop.permute.xlu1 %493 }
  0xa9   : > { %v518_v19 = vpop.permute.xlu2 %517 }
  0xaa   : > { %v417_v49 = vmax.f32 %v389_v39, 0.0  ;;  %v418_v50 = vmax.f32 %v408_v42, 0.0  ;;  %v520_v23 = vperm.slane %v518_v19, 0 }
  0xaf   : > { %v390_v21 = vpop.f32.mrf.mxu0  ;;  %v409_v22 = vpop.f32.mrf.mxu1 }
  0xb0   : > { %v391_v34 = vadd.f32 %v390_v21, %v340_v29  ;;  %v410_v37 = vadd.f32 %v409_v22, %v340_v29 }
  0xb2   : > { %v419_v45 = vmax.f32 %v391_v34, 0.0  ;;  %v420_v47 = vmax.f32 %v410_v37, 0.0 }
  0xb4   : > { %v427_v51 = vpack.c.bf16 %v419_v45, %v417_v49  ;;  %v428_v52 = vpack.c.bf16 %v420_v47, %v418_v50 }
  0xb7   : > { %v393_v26 = vpop.f32.mrf.mxu0  ;;  %v412_v27 = vpop.f32.mrf.mxu1 }
  0xb8   : > { %v394_v30 = vadd.f32 %v393_v26, %v345_v25  ;;  %v413_v32 = vadd.f32 %v412_v27, %v345_v25 }
  0xba   : > { %v421_v40 = vmax.f32 %v394_v30, 0.0  ;;  %v422_v43 = vmax.f32 %v413_v32, 0.0 }
  0xbf   : > { %v395_v33 = vpop.f32.mrf.mxu0  ;;  %v414_v36 = vpop.f32.mrf.mxu1 }
  0xc0   : > { %v396_v35 = vadd.f32 %v395_v33, %v350_v31  ;;  %v415_v38 = vadd.f32 %v414_v36, %v350_v31  ;;  %v539_v36 = vlaneseq }
  0xc2   : > { %v423_v41 = vmax.f32 %v396_v35, 0.0  ;;  %v424_v44 = vmax.f32 %v415_v38, 0.0  ;;  %vm541_vm3 = vcmp.lt.s32.totalorder %v539_v36, 256 }
  0xc4   : > { %v429_v46 = vpack.c.bf16 %v423_v41, %v421_v40  ;;  %v430_v48 = vpack.c.bf16 %v424_v44, %v422_v43 }
  0xc6   : > { %458 = vmatpush.bf16.msra.mxu2 %v429_v46  ;;  %472 = vmatpush.bf16.msra.mxu3 %v430_v48 }
  0xca   : > { %459 = vmatpush.bf16.msra.mxu2 %v427_v51  ;;  %473 = vmatpush.bf16.msra.mxu3 %v428_v52 }
  0xcd   : > { %658 = vmatmul.msk.bf16.vlgmr.msra.gmra.mxu2 %vm448_vm1, %v669_v53  ;;  %659 = vmatmul.msk.bf16.vlgmr.msra.gmra.mxu3 %vm448_vm1, %v669_v53 }
 0x150   : > { %v461_v55 = vpop.f32.mrf.mxu2  ;;  %v475_v56 = vpop.f32.mrf.mxu3 }
 0x151   : > { %v462_v57 = vadd.f32 %v461_v55, %v436_v54  ;;  %v476_v58 = vadd.f32 %v475_v56, %v436_v54 }
 0x153   : > { %v480_v61 = vmax.f32 %v462_v57, 0.0  ;;  %v481_v0 = vmax.f32 %v476_v58, 0.0 }
 0x155   : > { %v496_v6 = vmul.f32 %v489_v3, %v480_v61  ;;  %v497_v8 = vmul.f32 %v489_v3, %v481_v0 }
 0x158   : > { %v463_v60 = vpop.f32.mrf.mxu2  ;;  %v477_v63 = vpop.f32.mrf.mxu3 }
 0x159   : > { %v464_v62 = vadd.f32 %v463_v60, %v441_v59  ;;  %v478_v1 = vadd.f32 %v477_v63, %v441_v59 }
 0x15b   : > { %v482_v2 = vmax.f32 %v464_v62, 0.0  ;;  %v483_v5 = vmax.f32 %v478_v1, 0.0 }
 0x15d   : > { %v498_v7 = vmul.f32 %v494_v4, %v482_v2  ;;  %v499_v9 = vmul.f32 %v494_v4, %v483_v5 }
 0x15f   : > { %v500_v10 = vadd.f32 %v498_v7, %v496_v6  ;;  %v507_v11 = vadd.f32 %v499_v9, %v497_v8 }
 0x161   : > { %v501_v12 = vrot.slane %v500_v10, 4  ;;  %v508_v13 = vrot.slane %v507_v11, 4 }
 0x163   : > { %v502_v14 = vadd.f32 %v501_v12, %v500_v10  ;;  %v509_v15 = vadd.f32 %v508_v13, %v507_v11 }
 0x165   : > { %v503_v16 = vrot.slane %v502_v14, 2  ;;  %v510_v17 = vrot.slane %v509_v15, 2 }
 0x167   : > { %v504_v18 = vadd.f32 %v503_v16, %v502_v14  ;;  %v511_v20 = vadd.f32 %v510_v17, %v509_v15 }
 0x169   : > { %v505_v21 = vrot.slane %v504_v18, 1  ;;  %v512_v22 = vrot.slane %v511_v20, 1 }
 0x16b   : > { %v506_v24 = vadd.f32 %v505_v21, %v504_v18  ;;  %v513_v25 = vadd.f32 %v512_v22, %v511_v20 }
 0x16d   : > { %v521_v26 = vadd.f32 %v520_v23, %v506_v24  ;;  %v522_v27 = vadd.f32 %v520_v23, %v513_v25 }
 0x16f   : > { %v523_v28 = vsub.f32 0.0, %v521_v26  ;;  %v524_v29 = vsub.f32 0.0, %v522_v27 }
 0x171   : > { %v525_v30 = vmul.f32 1.442695, %v523_v28  ;;  %v527_v31 = vmul.f32 1.442695, %v524_v29 }
 0x173   : > { %713 = vpow2.f32 %v525_v30 }
 0x174   : > { %715 = vpow2.f32 %v527_v31 }
 0x179   : > { %v714_v32 = vpop.eup %713 }
 0x17a   : > { %v716_v33 = vpop.eup %715  ;;  %v529_v34 = vadd.f32 1.0, %v714_v32 }
 0x17b   : > { %v530_v35 = vadd.f32 1.0, %v716_v33 }
 0x17d   : > { %717 = vrcp.f32 %v530_v35 }
 0x17e   : > { %719 = vrcp.f32 %v529_v34 }
 0x183   : > { %v718_v37 = vpop.eup %717 }
 0x184   : > { %v535_v38 = vrot.slane %v718_v37, 7  ;;  %v720_v39 = vpop.eup %719 }
 0x186   : > { %v537_v40 = vsel %vm536_vm2, %v720_v39, %v535_v38 }
 0x187   : > { %543 = vst.msk [vmem:[%s318_s23] sm:$0x3] %vm541_vm3, %v537_v40 }
 0x188   : > { %748 = shalt.err (!%p745_p5)
}
 0x189   : > { %670 = dma.vmem_to_hbm [thread:$0]  (%p867_p6), %s558_s24, 32, %s560_s25, %s545_s6  }
 0x18a PF: > { %s571_s21 = sand.u32 1, %s771_s26   ;;  %p673_p7 = pnand %p627_p9, %p871_p8 }
 0x18b   : > { %s572_s18 = scalar_lea.sflag [#allocation5], %s571_s21 }
 0x18c   : > { %p674_p10 = pneg %p673_p7 }
 0x18e   : > { %766 = dma.done.wait (%p674_p10), %s572_s18, 32  }
 0x18f   : > { %768 = vsyncadd (%p674_p10), %s572_s18, 4294967264  ;;  %p19_p11 = scmp.ge.s32.totalorder %s852_s8, 4   ;;  %s967_s26 = smov %s775_s27 }
 0x190   : > { %s968_s27 = smov %s779_s28  ;;  %s969_s28 = smov %s865_s11 }
 0x191   : > { %s970_s29 = smov %s852_s8  ;;  %21 = sbr.rel (!%p19_p11) target bundleno = 6 (0x6), region = 126 }
 0x196   :  { %578 = vsyncpa [#allocation5], 1 }
 0x197   :  { %580 = vsyncpa [#allocation5 + $0x1], 1 }

</bundles_post_ra>
